<compile_context>
chip_gen: v7x
topology: tpu7x:2x2x1
jax: 0.10.0
libtpu: 0.0.40
codegen_flags: <defaults>
</compile_context>

<pallas_src>
import functools
import math

import jax
import jax.numpy as jnp
from jax.experimental import pallas as pl
from jax.experimental.pallas import tpu as pltpu


def resnet_block_kernel(x_ref, w1_ref, b1_ref, w2_ref, b2_ref, mask_ref, o_ref,
                        *, img_w):
    # x_ref   : (G*C, H*W)   G batch elements packed on sublanes, pixels on lanes
    # w*_ref  : (G*C, 9*S)   fused block-diagonal im2col weights
    # b*_ref  : (G*C, 1)     biases (lane-broadcast)
    # mask_ref: (9*S, H*W)   precomputed SAME-padding boundary masks (f32 0/1)
    # o_ref   : (G*C, H*W)   output tile (full-sublane, lane-dense stores)
    rows, HW = x_ref.shape
    S = mask_ref.shape[0] // 9          # padded sublane rows per tap

    x = x_ref[...]
    mask = mask_ref[...]

    def pad_rows(z):
        if S == rows:
            return z
        # Explicit zeros (never uninitialized memory) for the padded rows.
        return jnp.concatenate([z, jnp.zeros((S - rows, HW), z.dtype)], axis=0)

    def conv3x3(z, w_ref, b_ref):
        # z: (S, HW).  Build the 9 im2col taps with XLU lane rolls (zero-pad
        # halo handled by the precomputed mask), concat into an 8-sublane
        # aligned (9*S, HW) matrix, then ONE MXU matmul for the whole conv
        # over all G batch elements.
        taps = []
        for a in (-1, 0, 1):            # a = kh - 1
            for b in (-1, 0, 1):        # b = kw - 1
                s = a * img_w + b       # flattened-pixel shift
                taps.append(z if s == 0 else pltpu.roll(z, shift=(-s) % HW, axis=1))
        t_mat = jnp.concatenate(taps, axis=0) * mask        # (9*S, HW)
        y = jnp.dot(w_ref[...], t_mat,
                    preferred_element_type=jnp.float32)     # (G*C, HW)
        return y + b_ref[...]                               # bias, lane-broadcast

    y1 = jnp.maximum(conv3x3(pad_rows(x), w1_ref, b1_ref), 0.0)   # conv1 + ReLU
    y2 = conv3x3(pad_rows(y1), w2_ref, b2_ref)                    # conv2
    o_ref[...] = (x + y2).astype(o_ref.dtype)                     # residual add


def _fuse_weights(w, G, S):
    """OIHW (C,C,3,3) -> (G*C, 9*S) block-diagonal-per-batch im2col weight."""
    C = w.shape[0]
    wk = jnp.transpose(w, (2, 3, 0, 1)).reshape(9, C, C).astype(jnp.float32)
    eye = jnp.eye(G, dtype=jnp.float32)
    cols = []
    for k in range(9):
        blk = jnp.kron(eye, wk[k])                     # (G*C, G*C)
        blk = jnp.pad(blk, ((0, 0), (0, S - G * C)))   # zero cols for padded rows
        cols.append(blk)
    return jnp.concatenate(cols, axis=1)               # (G*C, 9*S)


def _build_tap_mask(H, W, S):
    """(9*S, H*W) f32 masks: 1 where the shifted source pixel is in-image."""
    HW = H * W
    pix = jnp.arange(HW)
    h = pix // W
    w = pix % W
    rows = []
    for a in (-1, 0, 1):
        for b in (-1, 0, 1):
            valid = (h + a >= 0) & (h + a < H) & (w + b >= 0) & (w + b < W)
            m = valid.astype(jnp.float32)[None, :]
            rows.append(jnp.broadcast_to(m, (S, HW)))
    return jnp.concatenate(rows, axis=0)


def resnet_block(x_nchw, w1, b1, w2, b2, *, batch_group=None):
    """PyTorch-compatible: x (B,C,H,W); w* (C,C,3,3) OIHW; b* (C,)."""
    B, C, H, W = x_nchw.shape
    HW = H * W

    # Pack G batch elements onto sublanes so each tap fills 8-sublane tiles.
    G = max(1, 8 // C) if batch_group is None else batch_group
    G = max(1, min(G, B))
    while B % G:
        G -= 1
    rows = G * C
    if (B // G) > 1 and rows % 8 != 0:
        G = B                      # single full-array block: any row count legal
        rows = G * C
    S = -(-rows // 8) * 8          # taps padded up to a multiple of 8 sublanes

    x2 = x_nchw.reshape(B * C, HW)             # free reshape; lanes = H*W
    w1f = _fuse_weights(w1, G, S)
    w2f = _fuse_weights(w2, G, S)
    b1c = jnp.tile(b1.astype(jnp.float32), G).reshape(rows, 1)
    b2c = jnp.tile(b2.astype(jnp.float32), G).reshape(rows, 1)
    mask = _build_tap_mask(H, W, S)

    kernel = functools.partial(resnet_block_kernel, img_w=W)
    out = pl.pallas_call(
        kernel,
        out_shape=jax.ShapeDtypeStruct((B * C, HW), x_nchw.dtype),
        grid=(B // G,),
        in_specs=[
            pl.BlockSpec((rows, HW), lambda i: (i, 0)),
            pl.BlockSpec((rows, 9 * S), lambda i: (0, 0)),
            pl.BlockSpec((rows, 1), lambda i: (0, 0)),
            pl.BlockSpec((rows, 9 * S), lambda i: (0, 0)),
            pl.BlockSpec((rows, 1), lambda i: (0, 0)),
            pl.BlockSpec((9 * S, HW), lambda i: (0, 0)),
        ],
        out_specs=pl.BlockSpec((rows, HW), lambda i: (i, 0)),
        compiler_params=pltpu.CompilerParams(
            dimension_semantics=("parallel",)),
    )(x2, w1f, b1c, w2f, b2c, mask)
    return out.reshape(B, C, H, W)


def _reference(x, w1, b1, w2, b2):
    """Pure-JAX reference (lax conv, NCHW/OIHW) for correctness checking."""
    dn = ("NCHW", "OIHW", "NCHW")
    y = jax.lax.conv_general_dilated(x, w1, (1, 1), "SAME",
                                     dimension_numbers=dn)
    y = jnp.maximum(y + b1.reshape(1, -1, 1, 1), 0.0)
    z = jax.lax.conv_general_dilated(y, w2, (1, 1), "SAME",
                                     dimension_numbers=dn)
    z = z + b2.reshape(1, -1, 1, 1)
    return x + z


if __name__ == "__main__":
    key = jax.random.PRNGKey(0)
    kx, kw1, kb1, kw2, kb2 = jax.random.split(key, 5)

    B, C, H, W = 2, 4, 16, 16                      # dim=4 ResnetBlock, 16x16 maps
    x = jax.random.normal(kx, (B, C, H, W), jnp.float32)

    # Deterministic params, same shapes/layout as nn.Conv2d(dim, dim, 3) (OIHW).
    fan_in = C * 3 * 3
    bound = 1.0 / math.sqrt(fan_in)
    w1 = jax.random.uniform(kw1, (C, C, 3, 3), jnp.float32, -bound, bound)
    b1 = jax.random.uniform(kb1, (C,), jnp.float32, -bound, bound)
    w2 = jax.random.uniform(kw2, (C, C, 3, 3), jnp.float32, -bound, bound)
    b2 = jax.random.uniform(kb2, (C,), jnp.float32, -bound, bound)

    out = jax.block_until_ready(resnet_block(x, w1, b1, w2, b2))

    ref = _reference(x, w1, b1, w2, b2)
    assert out.shape == (B, C, H, W), out.shape
    assert jnp.allclose(out, ref, atol=1e-4, rtol=1e-4), \
        float(jnp.max(jnp.abs(out - ref)))

    print("KERNEL_OK")
</pallas_src>

<mosaic_0001>
module attributes {stable_mosaic.version = 11 : i64} {
  func.func @resnet_block_kernel(%arg0: i32, %arg1: memref<8x256xf32, #tpu.memory_space<vmem>>, %arg2: memref<8x72xf32, #tpu.memory_space<vmem>>, %arg3: memref<8x1xf32, #tpu.memory_space<vmem>>, %arg4: memref<8x72xf32, #tpu.memory_space<vmem>>, %arg5: memref<8x1xf32, #tpu.memory_space<vmem>>, %arg6: memref<72x256xf32, #tpu.memory_space<vmem>>, %arg7: memref<8x256xf32, #tpu.memory_space<vmem>>) attributes {dimension_semantics = [#tpu.dimension_semantics<parallel>], iteration_bounds = array<i64: 1>, scalar_prefetch = 0 : i64, scratch_operands = 0 : i64, tpu.core_type = #tpu.core_type<tc>, window_params = [{transform_indices = @transform_0, window_bounds = array<i64: 8, 256>}, {pipeline_mode = #tpu.pipeline_mode<synchronous>, transform_indices = @transform_1, window_bounds = array<i64: 8, 72>}, {pipeline_mode = #tpu.pipeline_mode<synchronous>, transform_indices = @transform_2, window_bounds = array<i64: 8, 1>}, {pipeline_mode = #tpu.pipeline_mode<synchronous>, transform_indices = @transform_3, window_bounds = array<i64: 8, 72>}, {pipeline_mode = #tpu.pipeline_mode<synchronous>, transform_indices = @transform_4, window_bounds = array<i64: 8, 1>}, {pipeline_mode = #tpu.pipeline_mode<synchronous>, transform_indices = @transform_5, window_bounds = array<i64: 72, 256>}, {transform_indices = @transform_6, window_bounds = array<i64: 8, 256>}]} {
    %c0 = arith.constant 0 : index
    %c0_0 = arith.constant 0 : index
    %0 = vector.load %arg1[%c0, %c0_0] : memref<8x256xf32, #tpu.memory_space<vmem>>, vector<8x256xf32>
    %c0_1 = arith.constant 0 : index
    %c0_2 = arith.constant 0 : index
    %1 = vector.load %arg6[%c0_1, %c0_2] : memref<72x256xf32, #tpu.memory_space<vmem>>, vector<72x256xf32>
    %c17_i32 = arith.constant 17 : i32
    %2 = tpu.dynamic_rotate %0 by %c17_i32 dim 1 : vector<8x256xf32>, i32 -> vector<8x256xf32>
    %c16_i32 = arith.constant 16 : i32
    %3 = tpu.dynamic_rotate %0 by %c16_i32 dim 1 : vector<8x256xf32>, i32 -> vector<8x256xf32>
    %c15_i32 = arith.constant 15 : i32
    %4 = tpu.dynamic_rotate %0 by %c15_i32 dim 1 : vector<8x256xf32>, i32 -> vector<8x256xf32>
    %c1_i32 = arith.constant 1 : i32
    %5 = tpu.dynamic_rotate %0 by %c1_i32 dim 1 : vector<8x256xf32>, i32 -> vector<8x256xf32>
    %c255_i32 = arith.constant 255 : i32
    %6 = tpu.dynamic_rotate %0 by %c255_i32 dim 1 : vector<8x256xf32>, i32 -> vector<8x256xf32>
    %c241_i32 = arith.constant 241 : i32
    %7 = tpu.dynamic_rotate %0 by %c241_i32 dim 1 : vector<8x256xf32>, i32 -> vector<8x256xf32>
    %c240_i32 = arith.constant 240 : i32
    %8 = tpu.dynamic_rotate %0 by %c240_i32 dim 1 : vector<8x256xf32>, i32 -> vector<8x256xf32>
    %c239_i32 = arith.constant 239 : i32
    %9 = tpu.dynamic_rotate %0 by %c239_i32 dim 1 : vector<8x256xf32>, i32 -> vector<8x256xf32>
    %10 = tpu.concatenate %2, %3, %4, %5, %0, %6, %7, %8, %9 in 0 : vector<8x256xf32>, vector<8x256xf32>, vector<8x256xf32>, vector<8x256xf32>, vector<8x256xf32>, vector<8x256xf32>, vector<8x256xf32>, vector<8x256xf32>, vector<8x256xf32> -> vector<72x256xf32>
    %11 = arith.mulf %10, %1 : vector<72x256xf32>
    %c0_3 = arith.constant 0 : index
    %c0_4 = arith.constant 0 : index
    %12 = vector.load %arg2[%c0_3, %c0_4] : memref<8x72xf32, #tpu.memory_space<vmem>>, vector<8x72xf32>
    %cst = arith.constant dense<0.000000e+00> : vector<8x256xf32>
    %13 = tpu.matmul %12, %11, %cst {dimension_numbers = #tpu.dot_dimension_numbers<[1], [0], [0], [1], [0, 0, 1, 1], [], []>} : vector<8x72xf32>, vector<72x256xf32>, vector<8x256xf32> -> vector<8x256xf32>
    %c0_5 = arith.constant 0 : index
    %c0_6 = arith.constant 0 : index
    %14 = vector.load %arg3[%c0_5, %c0_6] : memref<8x1xf32, #tpu.memory_space<vmem>>, vector<8x1xf32>
    %15 = vector.broadcast %14 : vector<8x1xf32> to vector<8x256xf32>
    %16 = arith.addf %13, %15 : vector<8x256xf32>
    %cst_7 = arith.constant 0.000000e+00 : f32
    %17 = vector.broadcast %cst_7 : f32 to vector<8x256xf32>
    %18 = arith.maximumf %16, %17 : vector<8x256xf32>
    %c17_i32_8 = arith.constant 17 : i32
    %19 = tpu.dynamic_rotate %18 by %c17_i32_8 dim 1 : vector<8x256xf32>, i32 -> vector<8x256xf32>
    %c16_i32_9 = arith.constant 16 : i32
    %20 = tpu.dynamic_rotate %18 by %c16_i32_9 dim 1 : vector<8x256xf32>, i32 -> vector<8x256xf32>
    %c15_i32_10 = arith.constant 15 : i32
    %21 = tpu.dynamic_rotate %18 by %c15_i32_10 dim 1 : vector<8x256xf32>, i32 -> vector<8x256xf32>
    %c1_i32_11 = arith.constant 1 : i32
    %22 = tpu.dynamic_rotate %18 by %c1_i32_11 dim 1 : vector<8x256xf32>, i32 -> vector<8x256xf32>
    %c255_i32_12 = arith.constant 255 : i32
    %23 = tpu.dynamic_rotate %18 by %c255_i32_12 dim 1 : vector<8x256xf32>, i32 -> vector<8x256xf32>
    %c241_i32_13 = arith.constant 241 : i32
    %24 = tpu.dynamic_rotate %18 by %c241_i32_13 dim 1 : vector<8x256xf32>, i32 -> vector<8x256xf32>
    %c240_i32_14 = arith.constant 240 : i32
    %25 = tpu.dynamic_rotate %18 by %c240_i32_14 dim 1 : vector<8x256xf32>, i32 -> vector<8x256xf32>
    %c239_i32_15 = arith.constant 239 : i32
    %26 = tpu.dynamic_rotate %18 by %c239_i32_15 dim 1 : vector<8x256xf32>, i32 -> vector<8x256xf32>
    %27 = tpu.concatenate %19, %20, %21, %22, %18, %23, %24, %25, %26 in 0 : vector<8x256xf32>, vector<8x256xf32>, vector<8x256xf32>, vector<8x256xf32>, vector<8x256xf32>, vector<8x256xf32>, vector<8x256xf32>, vector<8x256xf32>, vector<8x256xf32> -> vector<72x256xf32>
    %28 = arith.mulf %27, %1 : vector<72x256xf32>
    %c0_16 = arith.constant 0 : index
    %c0_17 = arith.constant 0 : index
    %29 = vector.load %arg4[%c0_16, %c0_17] : memref<8x72xf32, #tpu.memory_space<vmem>>, vector<8x72xf32>
    %cst_18 = arith.constant dense<0.000000e+00> : vector<8x256xf32>
    %30 = tpu.matmul %29, %28, %cst_18 {dimension_numbers = #tpu.dot_dimension_numbers<[1], [0], [0], [1], [0, 0, 1, 1], [], []>} : vector<8x72xf32>, vector<72x256xf32>, vector<8x256xf32> -> vector<8x256xf32>
    %c0_19 = arith.constant 0 : index
    %c0_20 = arith.constant 0 : index
    %31 = vector.load %arg5[%c0_19, %c0_20] : memref<8x1xf32, #tpu.memory_space<vmem>>, vector<8x1xf32>
    %32 = vector.broadcast %31 : vector<8x1xf32> to vector<8x256xf32>
    %33 = arith.addf %30, %32 : vector<8x256xf32>
    %34 = arith.addf %0, %33 : vector<8x256xf32>
    %c0_21 = arith.constant 0 : index
    %c0_22 = arith.constant 0 : index
    %35 = vector.load %arg7[%c0_21, %c0_22] : memref<8x256xf32, #tpu.memory_space<vmem>>, vector<8x256xf32>
    tpu.vector_store %arg7[%c0_21, %c0_22], %34 {strides = array<i32>} : memref<8x256xf32, #tpu.memory_space<vmem>>, vector<8x256xf32>,
    return
  }
  func.func @transform_0(%arg0: i32) -> (i32, i32) {
    %c0_i32 = arith.constant 0 : i32
    %c0_i32_0 = arith.constant 0 : i32
    return %arg0, %c0_i32 : i32, i32
  }
  func.func @transform_1(%arg0: i32) -> (i32, i32) {
    %c0_i32 = arith.constant 0 : i32
    %c0_i32_0 = arith.constant 0 : i32
    %c0_i32_1 = arith.constant 0 : i32
    return %c0_i32, %c0_i32_0 : i32, i32
  }
  func.func @transform_2(%arg0: i32) -> (i32, i32) {
    %c0_i32 = arith.constant 0 : i32
    %c0_i32_0 = arith.constant 0 : i32
    %c0_i32_1 = arith.constant 0 : i32
    return %c0_i32, %c0_i32_0 : i32, i32
  }
  func.func @transform_3(%arg0: i32) -> (i32, i32) {
    %c0_i32 = arith.constant 0 : i32
    %c0_i32_0 = arith.constant 0 : i32
    %c0_i32_1 = arith.constant 0 : i32
    return %c0_i32, %c0_i32_0 : i32, i32
  }
  func.func @transform_4(%arg0: i32) -> (i32, i32) {
    %c0_i32 = arith.constant 0 : i32
    %c0_i32_0 = arith.constant 0 : i32
    %c0_i32_1 = arith.constant 0 : i32
    return %c0_i32, %c0_i32_0 : i32, i32
  }
  func.func @transform_5(%arg0: i32) -> (i32, i32) {
    %c0_i32 = arith.constant 0 : i32
    %c0_i32_0 = arith.constant 0 : i32
    %c0_i32_1 = arith.constant 0 : i32
    return %c0_i32, %c0_i32_0 : i32, i32
  }
  func.func @transform_6(%arg0: i32) -> (i32, i32) {
    %c0_i32 = arith.constant 0 : i32
    %c0_i32_0 = arith.constant 0 : i32
    return %arg0, %c0_i32 : i32, i32
  }
}

</mosaic_0001>

<bundles_post_ra>
// kernel: tpu_custom_call.1
= control target key start
LH: loop header
LB: loop body
LE: loop exit
PB: predicated region body
PF: predicated region fallthrough
CT: control target
= control target key end

     0   :  { %11 = vsyncpa [#allocation3], 0  ;;  %s830_s0 = inlined_call_operand.vmem [shape: f32[8,256], index: 0, kind: input, shape index: {}]   ;;  %s831_s1 = inlined_call_operand.hbm [shape: f32[8,72], index: 1, kind: input, shape index: {}]   ;;  %s832_s2 = inlined_call_operand.vmem [shape: f32[8,1], index: 2, kind: input, shape index: {}]   ;;  %s833_s3 = inlined_call_operand.vmem [shape: f32[8,72], index: 3, kind: input, shape index: {}]   ;;  %s834_s4 = inlined_call_operand.vmem [shape: f32[8,1], index: 4, kind: input, shape index: {}]   ;;  %s835_s5 = inlined_call_operand.hbm [shape: f32[72,256], index: 5, kind: input, shape index: {}]   ;;  %s836_s6 = inlined_call_operand.hbm [shape: f32[8,256], index: 6, kind: output, shape index: {}]  }
   0x1   :  { %12 = vsyncpa [#allocation6], 0 }
   0x2   :  { %13 = vsyncpa [#allocation4], 0  ;;  %s518_s21 = smov [#allocation2]   ;;  %s519_s23 = smov [#allocation5]  }
   0x3   :  { %s22_s22 = sshll.u32 %s518_s21, 4  ;;  %s37_s24 = sshll.u32 %s519_s23, 4  ;;  %s23_s22 = int_to_ptr.vmem [resolvable:$true] %s22_s22  ;;  %s567_s24 = int_to_ptr.vmem [resolvable:$true] %s37_s24 }
   0x4   :  { %s446_s27 = scalar_lea.hbm %s831_s1, 128 }
   0x5   :  { %p447_p0 = scmp.ne.s32.totalorder %s831_s1, %s446_s27  ;;  %p450_p1 = scmp.lt.u32.totalorder %s446_s27, %s831_s1 }
   0x7   :  { %p452_p2 = pnand %p450_p1, %p447_p0 }
   0x9   :  { %455 = shalt.err (!%p452_p2)
}
   0xa   :  { %s456_s8 = scalar_lea.vmem %s23_s22, 128  ;;  %p461_p4 = scmp.lt.s32.totalorder %s23_s22, %s23_s22 }
   0xb   :  { %p457_p3 = scmp.ne.s32.totalorder %s23_s22, %s456_s8  ;;  %p462_p5 = scmp.lt.s32.totalorder %s456_s8, %s456_s8 }
   0xd   :  { %p463_p6 = por %p462_p5, %p461_p4 }
   0xf   :  { %p464_p7 = pnand %p463_p6, %p457_p3 }
  0x11   :  { %467 = shalt.err (!%p464_p7)
}
  0x12   :  { %25 = dma.hbm_to_vmem [thread:$0]  %s831_s1, 128, %s23_s22, [#allocation3]  }
  0x13   :  { %s468_s13 = scalar_lea.hbm %s835_s5, 2304 }
  0x14   :  { %p469_p8 = scmp.ne.s32.totalorder %s835_s5, %s468_s13  ;;  %p472_p9 = scmp.lt.u32.totalorder %s468_s13, %s835_s5 }
  0x16   :  { %p474_p10 = pnand %p472_p9, %p469_p8 }
  0x18   :  { %477 = shalt.err (!%p474_p10)
}
  0x19   :  { %s478_s18 = scalar_lea.vmem %s567_s24, 2304  ;;  %p483_p12 = scmp.lt.s32.totalorder %s567_s24, %s567_s24 }
  0x1a   :  { %p479_p11 = scmp.ne.s32.totalorder %s567_s24, %s478_s18  ;;  %p484_p13 = scmp.lt.s32.totalorder %s478_s18, %s478_s18 }
  0x1c   :  { %p485_p0 = por %p484_p13, %p483_p12 }
  0x1e   :  { %p486_p1 = pnand %p485_p0, %p479_p11 }
  0x20   :  { %489 = shalt.err (!%p486_p1)
}
  0x21   :  { %s520_s1 = smov 256   ;;  %s521_s19 = smov 16  }
  0x22   :  { %43 = dma.hbm_to_vmem [thread:$0]  %s835_s5, 2304, %s567_s24, [#allocation6], %s520_s1, %s520_s1, %s521_s19  }
  0x23   :  { %512 = dma.done.wait [#allocation3], 128  }
  0x24   :  { %513 = vsyncadd [#allocation3], 4294967168 }
  0x25   :  { %514 = dma.done.wait [#allocation6], 2304  }
  0x26   :  { %515 = vsyncadd [#allocation6], 4294964992  ;;  %v602_v0 = vld [vmem:[%s830_s0] sm:$0xff]  ;;  %s522_s25 = smov 17   ;;  %v611_v1 = vld [vmem:[%s830_s0 + $0x8] sm:$0xff]  ;;  %s523_s5 = smov 15   ;;  %v74_v5 = vlaneseq }
  0x27   :  { %79 = vrot.lane.b32.xlu1 %v602_v0, %s521_s19  ;;  %70 = vrot.lane.b32.xlu0 %v602_v0, %s522_s25  ;;  %s524_s24 = smov 1   ;;  %s525_s0 = smov 127   ;;  %v527_v2 = vmov 0.0   ;;  %v528_v3 = vmov 0   ;;  %v147_v4 = vld [vmem:[%s832_s2] sm:$0xff]  ;;  %v646_v9 = vld [vmem:[#allocation5 + $0x10] sm:$0xff] }
  0x28   :  { %s526_s28 = smov 113   ;;  %221 = vmatprep.mubr.f32.mxu0 %v527_v2  ;;  %370 = vmatprep.mubr.f32.mxu1 %v527_v2  ;;  %s529_s29 = smov 112   ;;  %v644_v6 = vand.u32 127, %v74_v5  ;;  %v650_v10 = vld [vmem:[#allocation5] sm:$0xff]  ;;  %v652_v11 = vld [vmem:[#allocation5 + $0x8] sm:$0xff]  ;;  %v654_v12 = vld [vmem:[#allocation5 + $0x18] sm:$0xff] }
  0x29   :  { %445 = vset.pattern.permute.xlu0 %v528_v3  ;;  %s530_s30 = smov 111   ;;  %v669_v27 = vld [vmem:[#allocation5 + $0x20] sm:$0xff]  ;;  %v672_v28 = vld [vmem:[#allocation5 + $0x28] sm:$0xff]  ;;  %v678_v31 = vld [vmem:[#allocation5 + $0x30] sm:$0xff]  ;;  %vm153_vm8 = vcmask 588800   ;;  %s531_s11 = smov [#allocation7]  }
  0x2a   :  { %vm83_vm0 = vcmp.lt.s32.totalorder %v644_v6, 16  ;;  %vm76_vm1 = vcmp.lt.s32.totalorder %v644_v6, 17  ;;  %vm90_vm2 = vcmp.lt.s32.totalorder %v644_v6, 15  ;;  %vm97_vm3 = vcmp.lt.s32.totalorder %v644_v6, 1  ;;  %v680_v32 = vld [vmem:[#allocation5 + $0x38] sm:$0xff]  ;;  %v687_v37 = vld [vmem:[#allocation5 + $0x48] sm:$0xff] }
  0x2b   :  { %81 = vrot.lane.b32.xlu1 %v611_v1, %s521_s19  ;;  %72 = vrot.lane.b32.xlu0 %v611_v1, %s522_s25  ;;  %vm104_vm4 = vcmp.lt.s32.totalorder %v644_v6, 127  ;;  %v689_v38 = vld [vmem:[#allocation5 + $0x40] sm:$0xff]  ;;  %v695_v43 = vld [vmem:[#allocation5 + $0x50] sm:$0xff]  ;;  %v697_v44 = vld [vmem:[#allocation5 + $0x58] sm:$0xff]  ;;  %v137_v49 = vmul.f32 %v687_v37, %v611_v1  ;;  %vm111_vm5 = vcmp.lt.s32.totalorder %v644_v6, 113  ;;  %vm118_vm6 = vcmp.lt.s32.totalorder %v644_v6, 112 }
  0x2c   :  { %v136_v50 = vmul.f32 %v689_v38, %v602_v0  ;;  %v710_v59 = vld [vmem:[#allocation5 + $0x60] sm:$0xff]  ;;  %v713_v60 = vld [vmem:[#allocation5 + $0x68] sm:$0xff]  ;;  %v719_v63 = vld [vmem:[#allocation5 + $0x70] sm:$0xff]  ;;  %vm125_vm7 = vcmp.lt.s32.totalorder %v644_v6, 111  ;;  %s387_s12 = sshll.u32 %s531_s11, 4  ;;  %s388_s12 = int_to_ptr.vmem [resolvable:$true] %s387_s12 }
  0x2d   :  { %v721_v2 = vld [vmem:[#allocation5 + $0x78] sm:$0xff]  ;;  %s490_s13 = scalar_lea.vmem %s388_s12, 256  ;;  %p495_p3 = scmp.lt.s32.totalorder %s388_s12, %s388_s12 }
  0x2e   :  { %p491_p2 = scmp.ne.s32.totalorder %s388_s12, %s490_s13  ;;  %p496_p4 = scmp.lt.s32.totalorder %s490_s13, %s490_s13 }
  0x2f   :  { %88 = vrot.lane.b32.xlu1 %v611_v1, %s523_s5  ;;  %86 = vrot.lane.b32.xlu0 %v602_v0, %s523_s5 }
  0x30   :  { %p497_p5 = por %p496_p4, %p495_p3 }
  0x32   :  { %p498_p6 = pnand %p497_p5, %p491_p2 }
  0x33   :  { %95 = vrot.lane.b32.xlu1 %v611_v1, %s524_s24  ;;  %93 = vrot.lane.b32.xlu0 %v602_v0, %s524_s24 }
  0x37   :  { %102 = vrot.lane.b32.xlu1 %v611_v1, %s525_s0  ;;  %100 = vrot.lane.b32.xlu0 %v602_v0, %s525_s0 }
  0x3b   :  { %109 = vrot.lane.b32.xlu1 %v611_v1, %s526_s28  ;;  %107 = vrot.lane.b32.xlu0 %v602_v0, %s526_s28 }
  0x3f   :  { %116 = vrot.lane.b32.xlu1 %v611_v1, %s529_s29  ;;  %114 = vrot.lane.b32.xlu0 %v602_v0, %s529_s29 }
  0x43   :  { %123 = vrot.lane.b32.xlu1 %v611_v1, %s530_s30  ;;  %121 = vrot.lane.b32.xlu0 %v602_v0, %s530_s30 }
  0x47   :  { %150 = vperm.xlu0 %445, %v147_v4  }
  0x99   :  { %v80_v7 = vpop.permute.xlu1 %79  ;;  %v71_v8 = vpop.permute.xlu0 %70 }
  0x9d   :  { %v82_v13 = vpop.permute.xlu1 %81  ;;  %v73_v14 = vpop.permute.xlu0 %72 }
  0x9e   :  { %v84_v15 = vsel %vm83_vm0, %v80_v7, %v82_v13  ;;  %v85_v16 = vsel %vm83_vm0, %v82_v13, %v80_v7  ;;  %v77_v17 = vsel %vm76_vm1, %v71_v8, %v73_v14  ;;  %v78_v18 = vsel %vm76_vm1, %v73_v14, %v71_v8 }
  0x9f   :  { %v130_v19 = vmul.f32 %v85_v16, %v646_v9  ;;  %v128_v20 = vmul.f32 %v78_v18, %v650_v10  ;;  %v129_v21 = vmul.f32 %v77_v17, %v652_v11  ;;  %v131_v22 = vmul.f32 %v84_v15, %v654_v12  ;;  %v732_v16 = vld [vmem:[#allocation5 + $0x88] sm:$0xff]  ;;  %v734_v18 = vld [vmem:[#allocation5 + $0x80] sm:$0xff] }
  0xa1   :  { %v89_v23 = vpop.permute.xlu1 %88  ;;  %v87_v24 = vpop.permute.xlu0 %86  ;;  %v399_v25 = vpack.c.bf16 %v131_v22, %v129_v21  ;;  %v401_v26 = vpack.c.bf16 %v130_v19, %v128_v20 }
  0xa2   :  { %v91_v29 = vsel %vm90_vm2, %v87_v24, %v89_v23  ;;  %v92_v30 = vsel %vm90_vm2, %v89_v23, %v87_v24 }
  0xa3   :  { %400 = vmatprep.subr.bf16.mxu0 %v399_v25  ;;  %v132_v39 = vmul.f32 %v92_v30, %v669_v27  ;;  %v133_v40 = vmul.f32 %v91_v29, %v672_v28 }
  0xa4   :  { %402 = vmatpush1.bf16.msra.mxu0 %v401_v26  ;;  %v146_v26 = vld [vmem:[#allocation2] sm:$0xff] }
  0xa5   :  { %v96_v33 = vpop.permute.xlu1 %95  ;;  %v94_v34 = vpop.permute.xlu0 %93 }
  0xa6   :  { %v98_v35 = vsel %vm97_vm3, %v94_v34, %v96_v33  ;;  %v99_v36 = vsel %vm97_vm3, %v96_v33, %v94_v34 }
  0xa7   :  { %v134_v41 = vmul.f32 %v99_v36, %v678_v31  ;;  %v135_v42 = vmul.f32 %v98_v35, %v680_v32 }
  0xa9   :  { %v103_v45 = vpop.permute.xlu1 %102  ;;  %v101_v46 = vpop.permute.xlu0 %100  ;;  %v403_v47 = vpack.c.bf16 %v135_v42, %v133_v40  ;;  %v405_v48 = vpack.c.bf16 %v134_v41, %v132_v39  ;;  %v297_v40 = vld [vmem:[%s834_s4] sm:$0xff] }
  0xaa   :  { %v105_v51 = vsel %vm104_vm4, %v101_v46, %v103_v45  ;;  %v106_v52 = vsel %vm104_vm4, %v103_v45, %v101_v46 }
  0xab   :  { %v138_v53 = vmul.f32 %v105_v51, %v695_v43  ;;  %v139_v54 = vmul.f32 %v106_v52, %v697_v44  ;;  %404 = vmatprep.subr.bf16.mxu0 %v403_v47 }
  0xac   :  { %406 = vmatpush1.bf16.msra.mxu0 %v405_v48 }
  0xad   :  { %v110_v55 = vpop.permute.xlu1 %109  ;;  %v108_v56 = vpop.permute.xlu0 %107  ;;  %v407_v57 = vpack.c.bf16 %v139_v54, %v137_v49  ;;  %v409_v58 = vpack.c.bf16 %v138_v53, %v136_v50 }
  0xae   :  { %v112_v61 = vsel %vm111_vm5, %v108_v56, %v110_v55  ;;  %v113_v62 = vsel %vm111_vm5, %v110_v55, %v108_v56 }
  0xaf   :  { %408 = vmatprep.subr.bf16.mxu0 %v407_v57  ;;  %v140_v8 = vmul.f32 %v112_v61, %v710_v59  ;;  %v141_v13 = vmul.f32 %v113_v62, %v713_v60 }
  0xb0   :  { %410 = vmatpush1.bf16.msra.mxu0 %v409_v58 }
  0xb1   :  { %v117_v3 = vpop.permute.xlu1 %116  ;;  %v115_v4 = vpop.permute.xlu0 %114 }
  0xb2   :  { %v119_v5 = vsel %vm118_vm6, %v115_v4, %v117_v3  ;;  %v120_v7 = vsel %vm118_vm6, %v117_v3, %v115_v4 }
  0xb3   :  { %v142_v14 = vmul.f32 %v119_v5, %v719_v63  ;;  %v143_v15 = vmul.f32 %v120_v7, %v721_v2 }
  0xb5   :  { %v124_v17 = vpop.permute.xlu1 %123  ;;  %v122_v19 = vpop.permute.xlu0 %121  ;;  %v411_v20 = vpack.c.bf16 %v143_v15, %v141_v13  ;;  %v413_v21 = vpack.c.bf16 %v142_v14, %v140_v8 }
  0xb6   :  { %v126_v22 = vsel %vm125_vm7, %v122_v19, %v124_v17  ;;  %v127_v23 = vsel %vm125_vm7, %v124_v17, %v122_v19 }
  0xb7   :  { %v145_v24 = vmul.f32 %v127_v23, %v732_v16  ;;  %412 = vmatprep.subr.bf16.mxu0 %v411_v20  ;;  %v144_v25 = vmul.f32 %v126_v22, %v734_v18 }
  0xb8   :  { %414 = vmatpush1.bf16.msra.mxu0 %v413_v21 }
  0xb9   :  { %173 = vmatprep.subr.mxu0 %v145_v24 }
  0xbc   :  { %174 = vmatpush1.msra.mxu0 %v144_v25 }
  0xbd   :  { %397 = vmatmul.mubr.msk.f32.vlgmr.msra.gmra.mrb[0].mxu0 %vm153_vm8, %v146_v26 }
  0xc6   :  { %v151_v29 = vpop.permute.xlu0 %150 }
 0x190   :  { %v223_v30 = vpop.f32.mrb[0].mxu0 }
 0x191   :  { %v224_v33 = vadd.f32 %v223_v30, %v151_v29  ;;  %v225_v34 = vpop.f32.mrb[1].mxu0 }
 0x192   :  { %v226_v36 = vadd.f32 %v225_v34, %v151_v29 }
 0x193   :  { %v228_v35 = vmax.f32 %v224_v33, 0.0 }
 0x194   :  { %v229_v39 = vmax.f32 %v226_v36, 0.0 }
 0x195   :  { %236 = vrot.lane.b32.xlu0 %v228_v35, %s521_s19  ;;  %230 = vrot.lane.b32.xlu1 %v228_v35, %s522_s25 }
 0x199   :  { %242 = vrot.lane.b32.xlu0 %v228_v35, %s523_s5  ;;  %232 = vrot.lane.b32.xlu1 %v229_v39, %s522_s25 }
 0x19d   :  { %248 = vrot.lane.b32.xlu0 %v228_v35, %s524_s24  ;;  %238 = vrot.lane.b32.xlu1 %v229_v39, %s521_s19 }
 0x1a1   :  { %254 = vrot.lane.b32.xlu0 %v228_v35, %s525_s0  ;;  %244 = vrot.lane.b32.xlu1 %v229_v39, %s523_s5 }
 0x1a5   :  { %260 = vrot.lane.b32.xlu0 %v228_v35, %s526_s28  ;;  %250 = vrot.lane.b32.xlu1 %v229_v39, %s524_s24 }
 0x1a9   :  { %266 = vrot.lane.b32.xlu0 %v228_v35, %s529_s29  ;;  %256 = vrot.lane.b32.xlu1 %v229_v39, %s525_s0 }
 0x1ad   :  { %272 = vrot.lane.b32.xlu0 %v228_v35, %s530_s30  ;;  %262 = vrot.lane.b32.xlu1 %v229_v39, %s526_s28 }
 0x1b1   :  { %300 = vperm.xlu0 %445, %v297_v40   ;;  %268 = vrot.lane.b32.xlu1 %v229_v39, %s529_s29 }
 0x1b5   :  { %274 = vrot.lane.b32.xlu1 %v229_v39, %s530_s30 }
 0x207   :  { %v237_v41 = vpop.permute.xlu0 %236  ;;  %v231_v42 = vpop.permute.xlu1 %230 }
 0x20b   :  { %v243_v45 = vpop.permute.xlu0 %242  ;;  %v233_v46 = vpop.permute.xlu1 %232 }
 0x20c   :  { %v234_v47 = vsel %vm76_vm1, %v231_v42, %v233_v46  ;;  %v235_v48 = vsel %vm76_vm1, %v233_v46, %v231_v42 }
 0x20d   :  { %v278_v53 = vmul.f32 %v235_v48, %v650_v10  ;;  %v279_v55 = vmul.f32 %v234_v47, %v652_v11 }
 0x20f   :  { %v249_v49 = vpop.permute.xlu0 %248  ;;  %v239_v50 = vpop.permute.xlu1 %238 }
 0x210   :  { %v240_v51 = vsel %vm83_vm0, %v237_v41, %v239_v50  ;;  %v241_v52 = vsel %vm83_vm0, %v239_v50, %v237_v41 }
 0x211   :  { %v280_v54 = vmul.f32 %v241_v52, %v646_v9  ;;  %v281_v56 = vmul.f32 %v240_v51, %v654_v12 }
 0x213   :  { %v245_v57 = vpop.permute.xlu1 %244  ;;  %v415_v58 = vpack.c.bf16 %v281_v56, %v279_v55  ;;  %v417_v61 = vpack.c.bf16 %v280_v54, %v278_v53  ;;  %v255_v62 = vpop.permute.xlu0 %254 }
 0x214   :  { %v246_v3 = vsel %vm90_vm2, %v243_v45, %v245_v57  ;;  %v247_v4 = vsel %vm90_vm2, %v245_v57, %v243_v45 }
 0x215   :  { %416 = vmatprep.subr.bf16.mxu1 %v415_v58  ;;  %v282_v11 = vmul.f32 %v247_v4, %v669_v27  ;;  %v283_v12 = vmul.f32 %v246_v3, %v672_v28  ;;  %v287_v28 = vmul.f32 %v229_v39, %v687_v37 }
 0x216   :  { %418 = vmatpush1.bf16.msra.mxu1 %v417_v61 }
 0x217   :  { %v251_v5 = vpop.permute.xlu1 %250  ;;  %v261_v13 = vpop.permute.xlu0 %260 }
 0x218   :  { %v252_v9 = vsel %vm97_vm3, %v249_v49, %v251_v5  ;;  %v253_v10 = vsel %vm97_vm3, %v251_v5, %v249_v49 }
 0x219   :  { %v284_v7 = vmul.f32 %v253_v10, %v678_v31  ;;  %v285_v8 = vmul.f32 %v252_v9, %v680_v32  ;;  %v286_v31 = vmul.f32 %v228_v35, %v689_v38 }
 0x21b   :  { %v257_v14 = vpop.permute.xlu1 %256  ;;  %v419_v15 = vpack.c.bf16 %v285_v8, %v283_v12  ;;  %v421_v17 = vpack.c.bf16 %v284_v7, %v282_v11  ;;  %v267_v24 = vpop.permute.xlu0 %266 }
 0x21c   :  { %v258_v19 = vsel %vm104_vm4, %v255_v62, %v257_v14  ;;  %v259_v20 = vsel %vm104_vm4, %v257_v14, %v255_v62 }
 0x21d   :  { %v288_v21 = vmul.f32 %v258_v19, %v695_v43  ;;  %v289_v27 = vmul.f32 %v259_v20, %v697_v44  ;;  %420 = vmatprep.subr.bf16.mxu1 %v419_v15 }
 0x21e   :  { %422 = vmatpush1.bf16.msra.mxu1 %v421_v17 }
 0x21f   :  { %v263_v32 = vpop.permute.xlu1 %262  ;;  %v423_v22 = vpack.c.bf16 %v289_v27, %v287_v28  ;;  %v425_v23 = vpack.c.bf16 %v288_v21, %v286_v31  ;;  %v273_v34 = vpop.permute.xlu0 %272 }
 0x220   :  { %v264_v25 = vsel %vm111_vm5, %v261_v13, %v263_v32  ;;  %v265_v26 = vsel %vm111_vm5, %v263_v32, %v261_v13 }
 0x221   :  { %424 = vmatprep.subr.bf16.mxu1 %v423_v22  ;;  %v290_v38 = vmul.f32 %v264_v25, %v710_v59  ;;  %v291_v29 = vmul.f32 %v265_v26, %v713_v60  ;;  %v296_v60 = vld [vmem:[%s833_s3] sm:$0xff] }
 0x222   :  { %426 = vmatpush1.bf16.msra.mxu1 %v425_v23 }
 0x223   :  { %v269_v43 = vpop.permute.xlu1 %268 }
 0x224   :  { %v270_v44 = vsel %vm118_vm6, %v267_v24, %v269_v43  ;;  %v271_v37 = vsel %vm118_vm6, %v269_v43, %v267_v24 }
 0x225   :  { %v292_v30 = vmul.f32 %v270_v44, %v719_v63  ;;  %v293_v33 = vmul.f32 %v271_v37, %v721_v2 }
 0x227   :  { %v275_v35 = vpop.permute.xlu1 %274  ;;  %v427_v36 = vpack.c.bf16 %v293_v33, %v291_v29  ;;  %v429_v39 = vpack.c.bf16 %v292_v30, %v290_v38 }
 0x228   :  { %v277_v40 = vsel %vm125_vm7, %v275_v35, %v273_v34  ;;  %v276_v41 = vsel %vm125_vm7, %v273_v34, %v275_v35 }
 0x229   :  { %v295_v42 = vmul.f32 %v277_v40, %v732_v16  ;;  %428 = vmatprep.subr.bf16.mxu1 %v427_v36  ;;  %v294_v59 = vmul.f32 %v276_v41, %v734_v18 }
 0x22a   :  { %430 = vmatpush1.bf16.msra.mxu1 %v429_v39 }
 0x22b   :  { %322 = vmatprep.subr.mxu1 %v295_v42 }
 0x22e   :  { %323 = vmatpush1.msra.mxu1 %v294_v59 }
 0x22f   :  { %398 = vmatmul.mubr.msk.f32.vlgmr.msra.gmra.mrb[0].mxu1 %vm153_vm8, %v296_v60 }
 0x230   :  { %v301_v63 = vpop.permute.xlu0 %300 }
 0x302   :  { %v372_v2 = vpop.f32.mrb[0].mxu1 }
 0x303   :  { %v373_v45 = vadd.f32 %v372_v2, %v301_v63  ;;  %v374_v46 = vpop.f32.mrb[1].mxu1 }
 0x304   :  { %v375_v6 = vadd.f32 %v374_v46, %v301_v63 }
 0x305   :  { %v377_v16 = vadd.f32 %v373_v45, %v602_v0 }
 0x306   :  { %v378_v47 = vadd.f32 %v375_v6, %v611_v1 }
 0x307   :  { %379 = vst [vmem:[#allocation7] sm:$0xff] %v377_v16 }
 0x308   :  { %380 = vst [vmem:[#allocation7 + $0x8] sm:$0xff] %v378_v47 }
 0x309   :  { %501 = shalt.err (!%p498_p6)
}
 0x30a   :  { %s502_s15 = scalar_lea.hbm %s836_s6, 256 }
 0x30b   :  { %p503_p7 = scmp.ne.s32.totalorder %s836_s6, %s502_s15  ;;  %p506_p8 = scmp.lt.u32.totalorder %s502_s15, %s836_s6 }
 0x30d   :  { %p508_p9 = pnand %p506_p8, %p503_p7 }
 0x30f   :  { %511 = shalt.err (!%p508_p9)
}
 0x310   :  { %390 = dma.vmem_to_hbm [thread:$0]  %s388_s12, 256, %s836_s6, [#allocation4]  }
 0x311   :  { %516 = dma.done.wait [#allocation4], 256  }
 0x312   :  { %517 = vsyncadd [#allocation4], 4294967040 }
 0x313   :  { %394 = vsyncpa [#allocation3], 1 }
 0x314   :  { %395 = vsyncpa [#allocation6], 1 }
 0x315   :  { %396 = vsyncpa [#allocation4], 1 }

</bundles_post_ra>
